<compile_context>
chip_gen: v5e
topology: v5e:2x2
jax: 0.10.0
libtpu: 0.0.40
codegen_flags: <defaults>
</compile_context>

<pallas_src>
import numpy as np
import jax
import jax.numpy as jnp
from jax.experimental import pallas as pl
from jax.experimental.pallas import tpu as pltpu


# ----------------------------------------------------------------------------
# Pallas kernel: one grid step == one tile of G_BLK graphs.
# ----------------------------------------------------------------------------
def gnn_kernel(a_ref, h0_ref, pw_ref, wr_ref, ws_ref, b_ref, out_ref):
    f32, bf16 = jnp.float32, jnp.bfloat16
    g_blk, n_pad, _ = a_ref.shape
    hidden = h0_ref.shape[-1]
    m = g_blk * n_pad

    a = a_ref[...]          # [G, n, n]  bf16 (f32 for mean / weighted edges)
    h = h0_ref[...]         # [G, n, H]  f32

    for l in range(3):
        # Block-diagonal aggregation: per-graph A_g @ h_g with f32 accumulation.
        agg = jnp.einsum('gnm,gmh->gnh', a, h.astype(a.dtype),
                         preferred_element_type=f32)               # [G, n, H]
        # Fused lin_rel + lin_root as TWO dots on the packed M = G*n rows
        # (no lane-axis concat), bf16 operands, f32 accumulation.
        out = (jnp.dot(agg.reshape(m, hidden).astype(bf16), wr_ref[l],
                       preferred_element_type=f32)
               + jnp.dot(h.reshape(m, hidden).astype(bf16), ws_ref[l],
                         preferred_element_type=f32)
               + b_ref[l])                                          # [M, H]
        if l < 2:
            out = jnp.maximum(out, 0.0)
        h = out.reshape(g_blk, n_pad, hidden)

    # TODO(synk): dropout(p=0.2) is eval-mode identity here; a training-mode
    # version would use pltpu.prng_seed / pltpu.prng_random_bits.

    # global_mean_pool for all G_BLK graphs of this tile in ONE matmul:
    # pw is block-diagonal [G, G*n] with 1/|V_g| on valid rows, 0 on padding.
    out_ref[...] = jnp.dot(pw_ref[...], h.reshape(m, hidden),
                           preferred_element_type=f32)              # [G, H]


# ----------------------------------------------------------------------------
# Wrapper: embedding gather, per-graph block layout, graph packing, and one
# gridded pallas_call.  Assumes PyG-style batching (nodes of each graph
# contiguous, edges intra-graph).
# ----------------------------------------------------------------------------
def gnn_forward(x_cat, edge_index, batch, params, *, aggr="add",
                edge_weight=None, num_graphs=None, max_nodes=None,
                g_blk=None, target_m=256):
    f32 = jnp.float32
    vocabs = params["vocabs"]
    hidden = params["wr1"].shape[0]
    n_nodes = x_cat.shape[0]

    # Static sizing: pass num_graphs / max_nodes for a jit-stable program.
    # The fallbacks concretize traced values (host sync; not jit-friendly).
    if num_graphs is None:
        num_graphs = int(jnp.max(batch)) + 1
    counts = jnp.bincount(batch, length=num_graphs).astype(jnp.int32)   # [G]
    if max_nodes is None:
        max_nodes = int(jnp.max(counts))
    n_pad = ((max_nodes + 7) // 8) * 8                      # sublane align

    # Graphs per grid step: fill the MXU M dimension (~target_m packed rows).
    if g_blk is None:
        g_blk = max(1, min(target_m // n_pad, num_graphs))
    num_tiles = -(-num_graphs // g_blk)
    num_graphs_pad = num_tiles * g_blk

    # --- AtomEncoder as an embedding gather (no one-hot matmul). -------------
    offsets = np.concatenate([[0], np.cumsum(vocabs)[:-1]]).astype(np.int32)
    idx = x_cat + jnp.asarray(offsets)[None, :]              # [N, F]
    h0 = jnp.sum(params["emb"][idx], axis=1)                 # [N, H] f32

    # --- Per-graph / per-tile layout. ----------------------------------------
    graph_off = jnp.concatenate(
        [jnp.zeros((1,), jnp.int32), jnp.cumsum(counts)[:-1].astype(jnp.int32)])
    local = jnp.arange(n_nodes, dtype=jnp.int32) - graph_off[batch]
    tile = (batch // g_blk).astype(jnp.int32)
    slot = (batch % g_blk).astype(jnp.int32)

    # Node features scattered into packed slabs [T, G_BLK, n_pad, H].
    h0_blocks = jnp.zeros((num_tiles, g_blk, n_pad, hidden), f32
                          ).at[tile, slot, local].set(h0)

    # --- Per-graph aggregation blocks A_g [T, G_BLK, n_pad, n_pad]. -----------
    src, tgt = edge_index[0], edge_index[1]
    ew = (jnp.ones(src.shape[0], f32) if edge_weight is None
          else edge_weight.astype(f32))
    g_e = batch[tgt]                                         # edges intra-graph
    lt = tgt - graph_off[g_e]
    ls = src - graph_off[g_e]
    a_blocks = jnp.zeros((num_tiles, g_blk, n_pad, n_pad), f32
                         ).at[g_e // g_blk, g_e % g_blk, lt, ls].add(ew)
    if aggr == "mean":
        # PyG mean aggregation divides by the message COUNT.
        deg = jnp.zeros((n_nodes,), f32).at[tgt].add(1.0)
        inv = jnp.where(deg > 0, 1.0 / jnp.maximum(deg, 1.0), 0.0)
        inv_blocks = jnp.zeros((num_tiles, g_blk, n_pad), f32
                               ).at[tile, slot, local].set(inv)
        a_blocks = a_blocks * inv_blocks[..., None]
    elif aggr != "add":
        raise ValueError(f"unsupported aggr: {aggr}")
    # bf16 A is exact only for 0/1 add-aggregation with unit edge weights.
    exact_bf16 = (aggr == "add") and (edge_weight is None)
    a_blocks = a_blocks.astype(jnp.bfloat16 if exact_bf16 else f32)

    # --- Block-diagonal pool weights [T, G_BLK, G_BLK*n_pad] (0 on padding). --
    inv_cnt = 1.0 / jnp.maximum(counts.astype(f32), 1.0)
    pool = jnp.zeros((num_tiles, g_blk, g_blk * n_pad), f32
                     ).at[tile, slot, slot * n_pad + local].set(inv_cnt[batch])

    # --- Stacked layer weights (bf16) and biases (f32). -----------------------
    wr_all = jnp.stack([params["wr1"], params["wr2"], params["wr3"]]
                       ).astype(jnp.bfloat16)                # [3, H, H]
    ws_all = jnp.stack([params["ws1"], params["ws2"], params["ws3"]]
                       ).astype(jnp.bfloat16)                # [3, H, H]
    b_all = jnp.stack([params["br1"], params["br2"], params["br3"]])  # [3,1,H]

    # --- VMEM budget (v7x has 64 MiB physical / 32 MiB scoped default). -------
    a_bytes = 2 if exact_bf16 else 4
    per_step = (g_blk * n_pad * n_pad * a_bytes              # A tile
                + g_blk * n_pad * hidden * 4                 # h0 tile
                + g_blk * g_blk * n_pad * 4                  # pool tile
                + g_blk * hidden * 4                         # out tile
                + 3 * hidden * hidden * 2 * 2                # wr + ws (bf16)
                + 3 * hidden * 4                             # biases
                + 4 * g_blk * n_pad * hidden * 4)            # intermediates
    vmem_limit = int(min(48 << 20, max(32 << 20, 6 * per_step)))

    const3 = lambda t: (0, 0, 0)
    pooled = pl.pallas_call(
        gnn_kernel,
        out_shape=jax.ShapeDtypeStruct((num_tiles, g_blk, hidden), f32),
        grid=(num_tiles,),
        in_specs=[
            pl.BlockSpec((None, g_blk, n_pad, n_pad), lambda t: (t, 0, 0, 0)),
            pl.BlockSpec((None, g_blk, n_pad, hidden), lambda t: (t, 0, 0, 0)),
            pl.BlockSpec((None, g_blk, g_blk * n_pad), lambda t: (t, 0, 0)),
            pl.BlockSpec((3, hidden, hidden), const3),       # Wr (all layers)
            pl.BlockSpec((3, hidden, hidden), const3),       # Ws (all layers)
            pl.BlockSpec((3, 1, hidden), const3),            # biases
        ],
        out_specs=pl.BlockSpec((None, g_blk, hidden), lambda t: (t, 0, 0)),
        compiler_params=pltpu.CompilerParams(
            dimension_semantics=("parallel",),               # v7x: both TCs
            vmem_limit_bytes=vmem_limit),
    )(a_blocks, h0_blocks, pool, wr_all, ws_all, b_all)

    pooled = pooled.reshape(num_graphs_pad, hidden)[:num_graphs]   # [G, H]

    # Final Linear(H, 1) + sigmoid: tiny epilogue kept outside the kernel so
    # the kernel's output slab is H-wide, not 1-wide.
    logits = pooled @ params["wlin"] + params["blin"]        # [G, 1]
    return jax.nn.sigmoid(logits)


# ----------------------------------------------------------------------------
# Deterministic parameter construction (synthetic, no checkpoint).
# ----------------------------------------------------------------------------
def init_params(key, hidden, vocabs):
    keys = jax.random.split(key, 12)
    V = int(sum(vocabs))

    def lin_w(k, fan_in, fan_out):
        bound = 1.0 / np.sqrt(fan_in)
        # Stored pre-transposed so the kernel does x @ W (== x @ W_torch.T).
        return jax.random.uniform(k, (fan_in, fan_out), jnp.float32, -bound, bound)

    def lin_b(k, fan_in, fan_out):
        bound = 1.0 / np.sqrt(fan_in)
        return jax.random.uniform(k, (1, fan_out), jnp.float32, -bound, bound)

    return {
        "vocabs": list(vocabs),
        # AtomEncoder: concatenated embedding tables, looked up by gather.
        "emb": jax.random.normal(keys[0], (V, hidden), jnp.float32) * 0.1,
        # GraphConv i: lin_rel (weight + bias), lin_root (no bias)
        "wr1": lin_w(keys[1], hidden, hidden), "br1": lin_b(keys[2], hidden, hidden),
        "ws1": lin_w(keys[3], hidden, hidden),
        "wr2": lin_w(keys[4], hidden, hidden), "br2": lin_b(keys[5], hidden, hidden),
        "ws2": lin_w(keys[6], hidden, hidden),
        "wr3": lin_w(keys[7], hidden, hidden), "br3": lin_b(keys[8], hidden, hidden),
        "ws3": lin_w(keys[9], hidden, hidden),
        # Final Linear(hidden, 1), pre-transposed: [H, 1] and [1, 1].
        "wlin": lin_w(keys[10], hidden, 1),
        "blin": lin_b(keys[11], hidden, 1),
    }


# Plain-JAX f32 reference of the same math (sanity check).
def gnn_reference(x_cat, edge_index, batch, params, *, aggr="add",
                  edge_weight=None, num_graphs=None):
    vocabs = params["vocabs"]
    n = x_cat.shape[0]
    if num_graphs is None:
        num_graphs = int(jnp.max(batch)) + 1
    onehot = jnp.concatenate(
        [jax.nn.one_hot(x_cat[:, f], vocabs[f], dtype=jnp.float32)
         for f in range(len(vocabs))], axis=1)
    h = onehot @ params["emb"]
    src, tgt = edge_index[0], edge_index[1]
    ew = (jnp.ones(src.shape[0], jnp.float32) if edge_weight is None
          else edge_weight.astype(jnp.float32))
    A = jnp.zeros((n, n), jnp.float32).at[tgt, src].add(ew)
    if aggr == "mean":
        deg = jnp.zeros((n,), jnp.float32).at[tgt].add(1.0)
        A = A * jnp.where(deg > 0, 1.0 / jnp.maximum(deg, 1.0), 0.0)[:, None]

    def conv(h, wr, br, ws):
        return (A @ h) @ wr + br + h @ ws

    h = jax.nn.relu(conv(h, params["wr1"], params["br1"], params["ws1"]))
    h = jax.nn.relu(conv(h, params["wr2"], params["br2"], params["ws2"]))
    h = conv(h, params["wr3"], params["br3"], params["ws3"])
    gone = jax.nn.one_hot(batch, num_graphs, dtype=jnp.float32)
    pooled = (gone / jnp.maximum(jnp.sum(gone, 0), 1.0)[None, :]).T @ h
    logits = pooled @ params["wlin"] + params["blin"]
    return jax.nn.sigmoid(logits)


if __name__ == "__main__":
    key = jax.random.PRNGKey(0)
    hidden_size = 32
    vocabs = (5, 4, 3)              # 3 categorical atom features
    sizes = [8, 6, 7, 5]            # variable graph sizes exercise padding
    num_graphs = len(sizes)
    n_nodes = sum(sizes)

    k_feat, k_param = jax.random.split(key)
    # Categorical node features x: [N, num_features], int
    x_cat = jax.random.randint(
        k_feat, (n_nodes, len(vocabs)), 0, min(vocabs), dtype=jnp.int32)

    # Ring edges inside each graph (both directions): edge_index [2, E]
    src_list, tgt_list = [], []
    base = 0
    for n in sizes:
        for i in range(n):
            j = (i + 1) % n
            src_list += [base + i, base + j]
            tgt_list += [base + j, base + i]
        base += n
    edge_index = jnp.array([src_list, tgt_list], dtype=jnp.int32)

    batch = jnp.concatenate(
        [jnp.full((n,), g, jnp.int32) for g, n in enumerate(sizes)])

    params = init_params(k_param, hidden_size, vocabs)

    # g_blk=2 -> 2 graphs packed per grid step, grid=(2,) (even: both v7x TCs).
    out = gnn_forward(x_cat, edge_index, batch, params, aggr="add",
                      num_graphs=num_graphs, max_nodes=max(sizes), g_blk=2)
    out = jax.block_until_ready(out)

    ref = gnn_reference(x_cat, edge_index, batch, params, aggr="add",
                        num_graphs=num_graphs)
    assert out.shape == (num_graphs, 1)
    # bf16 aggregation + bf16 lin matmuls -> looser tolerance vs. f32 reference.
    assert np.allclose(np.asarray(out), np.asarray(ref), rtol=3e-2, atol=3e-2)

    print("KERNEL_OK")
</pallas_src>

<mosaic_0001>
module attributes {stable_mosaic.version = 11 : i64} {
  func.func @gnn_kernel(%arg0: i32, %arg1: memref<1x2x8x8xbf16, #tpu.memory_space<vmem>>, %arg2: memref<1x2x8x32xf32, #tpu.memory_space<vmem>>, %arg3: memref<1x2x16xf32, #tpu.memory_space<vmem>>, %arg4: memref<3x32x32xbf16, #tpu.memory_space<vmem>>, %arg5: memref<3x32x32xbf16, #tpu.memory_space<vmem>>, %arg6: memref<3x1x32xf32, #tpu.memory_space<vmem>>, %arg7: memref<1x2x32xf32, #tpu.memory_space<vmem>>) attributes {dimension_semantics = [#tpu.dimension_semantics<parallel>], iteration_bounds = array<i64: 2>, scalar_prefetch = 0 : i64, scratch_operands = 0 : i64, tpu.core_type = #tpu.core_type<tc>, window_params = [{transform_indices = @transform_0, window_bounds = array<i64: 1, 2, 8, 8>}, {transform_indices = @transform_1, window_bounds = array<i64: 1, 2, 8, 32>}, {transform_indices = @transform_2, window_bounds = array<i64: 1, 2, 16>}, {pipeline_mode = #tpu.pipeline_mode<synchronous>, transform_indices = @transform_3, window_bounds = array<i64: 3, 32, 32>}, {pipeline_mode = #tpu.pipeline_mode<synchronous>, transform_indices = @transform_4, window_bounds = array<i64: 3, 32, 32>}, {pipeline_mode = #tpu.pipeline_mode<synchronous>, transform_indices = @transform_5, window_bounds = array<i64: 3, 1, 32>}, {transform_indices = @transform_6, window_bounds = array<i64: 1, 2, 32>}]} {
    %c0 = arith.constant 0 : index
    %c0_0 = arith.constant 0 : index
    %c0_1 = arith.constant 0 : index
    %c0_2 = arith.constant 0 : index
    %0 = vector.load %arg1[%c0, %c0_0, %c0_1, %c0_2] : memref<1x2x8x8xbf16, #tpu.memory_space<vmem>>, vector<1x2x8x8xbf16>
    %1 = vector.shape_cast %0 : vector<1x2x8x8xbf16> to vector<2x8x8xbf16>
    %c0_3 = arith.constant 0 : index
    %c0_4 = arith.constant 0 : index
    %c0_5 = arith.constant 0 : index
    %c0_6 = arith.constant 0 : index
    %2 = vector.load %arg2[%c0_3, %c0_4, %c0_5, %c0_6] : memref<1x2x8x32xf32, #tpu.memory_space<vmem>>, vector<1x2x8x32xf32>
    %3 = vector.shape_cast %2 : vector<1x2x8x32xf32> to vector<2x8x32xf32>
    %4 = arith.truncf %3 : vector<2x8x32xf32> to vector<2x8x32xbf16>
    "tpu.trace_start"() <{level = 10 : i32, message = "gnm,gmh->gnh"}> : () -> ()
    %cst = arith.constant dense<0.000000e+00> : vector<2x8x32xf32>
    %5 = tpu.matmul %1, %4, %cst {dimension_numbers = #tpu.dot_dimension_numbers<[2], [1], [1], [2], [0, 0, 0, 1, 1, 2], [0], [0]>} : vector<2x8x8xbf16>, vector<2x8x32xbf16>, vector<2x8x32xf32> -> vector<2x8x32xf32>
    "tpu.trace_stop"() : () -> ()
    %6 = vector.shape_cast %5 : vector<2x8x32xf32> to vector<16x32xf32>
    %7 = arith.truncf %6 : vector<16x32xf32> to vector<16x32xbf16>
    %c0_7 = arith.constant 0 : index
    %c0_8 = arith.constant 0 : index
    %c0_9 = arith.constant 0 : index
    %8 = vector.load %arg4[%c0_7, %c0_8, %c0_9] : memref<3x32x32xbf16, #tpu.memory_space<vmem>>, vector<1x32x32xbf16>
    %9 = vector.shape_cast %8 : vector<1x32x32xbf16> to vector<32x32xbf16>
    %cst_10 = arith.constant dense<0.000000e+00> : vector<16x32xf32>
    %10 = tpu.matmul %7, %9, %cst_10 {dimension_numbers = #tpu.dot_dimension_numbers<[1], [0], [0], [1], [0, 0, 1, 1], [], []>} : vector<16x32xbf16>, vector<32x32xbf16>, vector<16x32xf32> -> vector<16x32xf32>
    %11 = vector.shape_cast %3 : vector<2x8x32xf32> to vector<16x32xf32>
    %12 = arith.truncf %11 : vector<16x32xf32> to vector<16x32xbf16>
    %c0_11 = arith.constant 0 : index
    %c0_12 = arith.constant 0 : index
    %c0_13 = arith.constant 0 : index
    %13 = vector.load %arg5[%c0_11, %c0_12, %c0_13] : memref<3x32x32xbf16, #tpu.memory_space<vmem>>, vector<1x32x32xbf16>
    %14 = vector.shape_cast %13 : vector<1x32x32xbf16> to vector<32x32xbf16>
    %cst_14 = arith.constant dense<0.000000e+00> : vector<16x32xf32>
    %15 = tpu.matmul %12, %14, %cst_14 {dimension_numbers = #tpu.dot_dimension_numbers<[1], [0], [0], [1], [0, 0, 1, 1], [], []>} : vector<16x32xbf16>, vector<32x32xbf16>, vector<16x32xf32> -> vector<16x32xf32>
    %16 = arith.addf %10, %15 : vector<16x32xf32>
    %c0_15 = arith.constant 0 : index
    %c0_16 = arith.constant 0 : index
    %c0_17 = arith.constant 0 : index
    %17 = vector.load %arg6[%c0_15, %c0_16, %c0_17] : memref<3x1x32xf32, #tpu.memory_space<vmem>>, vector<1x1x32xf32>
    %18 = vector.shape_cast %17 : vector<1x1x32xf32> to vector<1x32xf32>
    %19 = vector.broadcast %18 : vector<1x32xf32> to vector<16x32xf32>
    %20 = arith.addf %16, %19 : vector<16x32xf32>
    %cst_18 = arith.constant 0.000000e+00 : f32
    %21 = vector.broadcast %cst_18 : f32 to vector<16x32xf32>
    %22 = arith.maximumf %20, %21 : vector<16x32xf32>
    %23 = vector.shape_cast %22 : vector<16x32xf32> to vector<2x8x32xf32>
    %24 = arith.truncf %23 : vector<2x8x32xf32> to vector<2x8x32xbf16>
    "tpu.trace_start"() <{level = 10 : i32, message = "gnm,gmh->gnh"}> : () -> ()
    %cst_19 = arith.constant dense<0.000000e+00> : vector<2x8x32xf32>
    %25 = tpu.matmul %1, %24, %cst_19 {dimension_numbers = #tpu.dot_dimension_numbers<[2], [1], [1], [2], [0, 0, 0, 1, 1, 2], [0], [0]>} : vector<2x8x8xbf16>, vector<2x8x32xbf16>, vector<2x8x32xf32> -> vector<2x8x32xf32>
    "tpu.trace_stop"() : () -> ()
    %26 = vector.shape_cast %25 : vector<2x8x32xf32> to vector<16x32xf32>
    %27 = arith.truncf %26 : vector<16x32xf32> to vector<16x32xbf16>
    %c1 = arith.constant 1 : index
    %c0_20 = arith.constant 0 : index
    %c0_21 = arith.constant 0 : index
    %28 = vector.load %arg4[%c1, %c0_20, %c0_21] : memref<3x32x32xbf16, #tpu.memory_space<vmem>>, vector<1x32x32xbf16>
    %29 = vector.shape_cast %28 : vector<1x32x32xbf16> to vector<32x32xbf16>
    %cst_22 = arith.constant dense<0.000000e+00> : vector<16x32xf32>
    %30 = tpu.matmul %27, %29, %cst_22 {dimension_numbers = #tpu.dot_dimension_numbers<[1], [0], [0], [1], [0, 0, 1, 1], [], []>} : vector<16x32xbf16>, vector<32x32xbf16>, vector<16x32xf32> -> vector<16x32xf32>
    %31 = vector.shape_cast %23 : vector<2x8x32xf32> to vector<16x32xf32>
    %32 = arith.truncf %31 : vector<16x32xf32> to vector<16x32xbf16>
    %c1_23 = arith.constant 1 : index
    %c0_24 = arith.constant 0 : index
    %c0_25 = arith.constant 0 : index
    %33 = vector.load %arg5[%c1_23, %c0_24, %c0_25] : memref<3x32x32xbf16, #tpu.memory_space<vmem>>, vector<1x32x32xbf16>
    %34 = vector.shape_cast %33 : vector<1x32x32xbf16> to vector<32x32xbf16>
    %cst_26 = arith.constant dense<0.000000e+00> : vector<16x32xf32>
    %35 = tpu.matmul %32, %34, %cst_26 {dimension_numbers = #tpu.dot_dimension_numbers<[1], [0], [0], [1], [0, 0, 1, 1], [], []>} : vector<16x32xbf16>, vector<32x32xbf16>, vector<16x32xf32> -> vector<16x32xf32>
    %36 = arith.addf %30, %35 : vector<16x32xf32>
    %c1_27 = arith.constant 1 : index
    %c0_28 = arith.constant 0 : index
    %c0_29 = arith.constant 0 : index
    %37 = vector.load %arg6[%c1_27, %c0_28, %c0_29] : memref<3x1x32xf32, #tpu.memory_space<vmem>>, vector<1x1x32xf32>
    %38 = vector.shape_cast %37 : vector<1x1x32xf32> to vector<1x32xf32>
    %39 = vector.broadcast %38 : vector<1x32xf32> to vector<16x32xf32>
    %40 = arith.addf %36, %39 : vector<16x32xf32>
    %cst_30 = arith.constant 0.000000e+00 : f32
    %41 = vector.broadcast %cst_30 : f32 to vector<16x32xf32>
    %42 = arith.maximumf %40, %41 : vector<16x32xf32>
    %43 = vector.shape_cast %42 : vector<16x32xf32> to vector<2x8x32xf32>
    %44 = arith.truncf %43 : vector<2x8x32xf32> to vector<2x8x32xbf16>
    "tpu.trace_start"() <{level = 10 : i32, message = "gnm,gmh->gnh"}> : () -> ()
    %cst_31 = arith.constant dense<0.000000e+00> : vector<2x8x32xf32>
    %45 = tpu.matmul %1, %44, %cst_31 {dimension_numbers = #tpu.dot_dimension_numbers<[2], [1], [1], [2], [0, 0, 0, 1, 1, 2], [0], [0]>} : vector<2x8x8xbf16>, vector<2x8x32xbf16>, vector<2x8x32xf32> -> vector<2x8x32xf32>
    "tpu.trace_stop"() : () -> ()
    %46 = vector.shape_cast %45 : vector<2x8x32xf32> to vector<16x32xf32>
    %47 = arith.truncf %46 : vector<16x32xf32> to vector<16x32xbf16>
    %c2 = arith.constant 2 : index
    %c0_32 = arith.constant 0 : index
    %c0_33 = arith.constant 0 : index
    %48 = vector.load %arg4[%c2, %c0_32, %c0_33] : memref<3x32x32xbf16, #tpu.memory_space<vmem>>, vector<1x32x32xbf16>
    %49 = vector.shape_cast %48 : vector<1x32x32xbf16> to vector<32x32xbf16>
    %cst_34 = arith.constant dense<0.000000e+00> : vector<16x32xf32>
    %50 = tpu.matmul %47, %49, %cst_34 {dimension_numbers = #tpu.dot_dimension_numbers<[1], [0], [0], [1], [0, 0, 1, 1], [], []>} : vector<16x32xbf16>, vector<32x32xbf16>, vector<16x32xf32> -> vector<16x32xf32>
    %51 = vector.shape_cast %43 : vector<2x8x32xf32> to vector<16x32xf32>
    %52 = arith.truncf %51 : vector<16x32xf32> to vector<16x32xbf16>
    %c2_35 = arith.constant 2 : index
    %c0_36 = arith.constant 0 : index
    %c0_37 = arith.constant 0 : index
    %53 = vector.load %arg5[%c2_35, %c0_36, %c0_37] : memref<3x32x32xbf16, #tpu.memory_space<vmem>>, vector<1x32x32xbf16>
    %54 = vector.shape_cast %53 : vector<1x32x32xbf16> to vector<32x32xbf16>
    %cst_38 = arith.constant dense<0.000000e+00> : vector<16x32xf32>
    %55 = tpu.matmul %52, %54, %cst_38 {dimension_numbers = #tpu.dot_dimension_numbers<[1], [0], [0], [1], [0, 0, 1, 1], [], []>} : vector<16x32xbf16>, vector<32x32xbf16>, vector<16x32xf32> -> vector<16x32xf32>
    %56 = arith.addf %50, %55 : vector<16x32xf32>
    %c2_39 = arith.constant 2 : index
    %c0_40 = arith.constant 0 : index
    %c0_41 = arith.constant 0 : index
    %57 = vector.load %arg6[%c2_39, %c0_40, %c0_41] : memref<3x1x32xf32, #tpu.memory_space<vmem>>, vector<1x1x32xf32>
    %58 = vector.shape_cast %57 : vector<1x1x32xf32> to vector<1x32xf32>
    %59 = vector.broadcast %58 : vector<1x32xf32> to vector<16x32xf32>
    %60 = arith.addf %56, %59 : vector<16x32xf32>
    %61 = vector.shape_cast %60 : vector<16x32xf32> to vector<2x8x32xf32>
    %c0_42 = arith.constant 0 : index
    %c0_43 = arith.constant 0 : index
    %c0_44 = arith.constant 0 : index
    %62 = vector.load %arg3[%c0_42, %c0_43, %c0_44] : memref<1x2x16xf32, #tpu.memory_space<vmem>>, vector<1x2x16xf32>
    %63 = vector.shape_cast %62 : vector<1x2x16xf32> to vector<2x16xf32>
    %64 = vector.shape_cast %61 : vector<2x8x32xf32> to vector<16x32xf32>
    %cst_45 = arith.constant dense<0.000000e+00> : vector<2x32xf32>
    %65 = tpu.matmul %63, %64, %cst_45 {dimension_numbers = #tpu.dot_dimension_numbers<[1], [0], [0], [1], [0, 0, 1, 1], [], []>} : vector<2x16xf32>, vector<16x32xf32>, vector<2x32xf32> -> vector<2x32xf32>
    %c0_46 = arith.constant 0 : index
    %c0_47 = arith.constant 0 : index
    %c0_48 = arith.constant 0 : index
    %66 = vector.load %arg7[%c0_46, %c0_47, %c0_48] : memref<1x2x32xf32, #tpu.memory_space<vmem>>, vector<1x2x32xf32>
    %67 = vector.shape_cast %66 : vector<1x2x32xf32> to vector<2x32xf32>
    %68 = vector.shape_cast %65 : vector<2x32xf32> to vector<1x2x32xf32>
    tpu.vector_store %arg7[%c0_46, %c0_47, %c0_48], %68 {strides = array<i32>} : memref<1x2x32xf32, #tpu.memory_space<vmem>>, vector<1x2x32xf32>,
    return
  }
  func.func @transform_0(%arg0: i32) -> (i32, i32, i32, i32) {
    %c0_i32 = arith.constant 0 : i32
    %c0_i32_0 = arith.constant 0 : i32
    %c0_i32_1 = arith.constant 0 : i32
    %c0_i32_2 = arith.constant 0 : i32
    return %arg0, %c0_i32, %c0_i32_0, %c0_i32_1 : i32, i32, i32, i32
  }
  func.func @transform_1(%arg0: i32) -> (i32, i32, i32, i32) {
    %c0_i32 = arith.constant 0 : i32
    %c0_i32_0 = arith.constant 0 : i32
    %c0_i32_1 = arith.constant 0 : i32
    %c0_i32_2 = arith.constant 0 : i32
    return %arg0, %c0_i32, %c0_i32_0, %c0_i32_1 : i32, i32, i32, i32
  }
  func.func @transform_2(%arg0: i32) -> (i32, i32, i32) {
    %c0_i32 = arith.constant 0 : i32
    %c0_i32_0 = arith.constant 0 : i32
    %c0_i32_1 = arith.constant 0 : i32
    return %arg0, %c0_i32, %c0_i32_0 : i32, i32, i32
  }
  func.func @transform_3(%arg0: i32) -> (i32, i32, i32) {
    %c0_i32 = arith.constant 0 : i32
    %c0_i32_0 = arith.constant 0 : i32
    %c0_i32_1 = arith.constant 0 : i32
    %c0_i32_2 = arith.constant 0 : i32
    return %c0_i32, %c0_i32_0, %c0_i32_1 : i32, i32, i32
  }
  func.func @transform_4(%arg0: i32) -> (i32, i32, i32) {
    %c0_i32 = arith.constant 0 : i32
    %c0_i32_0 = arith.constant 0 : i32
    %c0_i32_1 = arith.constant 0 : i32
    %c0_i32_2 = arith.constant 0 : i32
    return %c0_i32, %c0_i32_0, %c0_i32_1 : i32, i32, i32
  }
  func.func @transform_5(%arg0: i32) -> (i32, i32, i32) {
    %c0_i32 = arith.constant 0 : i32
    %c0_i32_0 = arith.constant 0 : i32
    %c0_i32_1 = arith.constant 0 : i32
    %c0_i32_2 = arith.constant 0 : i32
    return %c0_i32, %c0_i32_0, %c0_i32_1 : i32, i32, i32
  }
  func.func @transform_6(%arg0: i32) -> (i32, i32, i32) {
    %c0_i32 = arith.constant 0 : i32
    %c0_i32_0 = arith.constant 0 : i32
    %c0_i32_1 = arith.constant 0 : i32
    return %arg0, %c0_i32, %c0_i32_0 : i32, i32, i32
  }
}

</mosaic_0001>

<bundles_post_ra>
// kernel: tpu_custom_call.1
= control target key start
LH: loop header
LB: loop body
LE: loop exit
PB: predicated region body
PF: predicated region fallthrough
CT: control target
= control target key end

     0   :  { %s1611_s0 = inlined_call_operand.hbm [shape: bf16[2,2,8,8], index: 0, kind: input, shape index: {}]   ;;  %s1612_s1 = inlined_call_operand.hbm [shape: f32[2,2,8,32], index: 1, kind: input, shape index: {}]   ;;  %s1613_s2 = inlined_call_operand.hbm [shape: f32[2,2,16], index: 2, kind: input, shape index: {}]   ;;  %s1614_s3 = inlined_call_operand.hbm [shape: bf16[3,32,32], index: 3, kind: input, shape index: {}]   ;;  %s1615_s4 = inlined_call_operand.hbm [shape: bf16[3,32,32], index: 4, kind: input, shape index: {}]   ;;  %s1616_s5 = inlined_call_operand.vmem [shape: f32[3,1,32], index: 5, kind: input, shape index: {}]   ;;  %s1617_s6 = inlined_call_operand.hbm [shape: f32[2,2,32], index: 6, kind: output, shape index: {}]  }
   0x1   :  { %1628 = sst [smem:[#allocation21_spill]] %s1612_s1 }
   0x2   :  { %1629 = sst [smem:[#allocation22_spill]] %s1614_s3 }
   0x3   :  { %1630 = sst [smem:[#allocation23_spill]] %s1615_s4 }
   0x4   :  { %11 = vsyncpa [#allocation3], 0 }
   0x5   :  { %13 = vsyncpa [#allocation3 + $0x1], 0 }
   0x6   :  { %14 = vsyncpa [#allocation6], 0 }
   0x7   :  { %16 = vsyncpa [#allocation6 + $0x1], 0 }
   0x8   :  { %17 = vsyncpa [#allocation9], 0 }
   0x9   :  { %18 = vsyncpa [#allocation4], 0 }
   0xa   :  { %20 = vsyncpa [#allocation4 + $0x1], 0  ;;  %s1358_s21 = smov 0   ;;  %s1360_s22 = smov 0  }
   0xb   :  { %s1362_s23 = smov 0   ;;  %s1364_s24 = smov 0  }
   0xc LB: > { %1631 = sst [smem:[#allocation16_spill]] %s1303_s21  ;;  %s1379_s25 = sadd.s32 4294967295, %s1315_s24   ;;  %s1315_s24 = sphi %s1364_s24, %s1652_s24   ;;  %s1311_s23 = sphi %s1362_s23, %s1654_s23   ;;  %s1307_s22 = sphi %s1360_s22, %s1656_s22   ;;  %s1303_s21 = sphi %s1358_s21, %s1655_s21  }
   0xd   : > { %1632 = sst [smem:[#allocation17_spill]] %s1311_s23  ;;  %s906_s26 = sadd.s32 4294967294, %s1315_s24  }
   0xe   : > { %p46_p0 = scmp.ne.s32.totalorder %s1307_s22, %s1303_s21  ;;  %p1626_p1 = scmp.eq.s32.totalorder %s1379_s25, 0 }
   0xf   : > { %p185_p2 = scmp.eq.s32.totalorder %s1379_s25, 1  ;;  %p191_p3 = scmp.eq.s32.totalorder %s906_s26, 1 }
  0x10   : > { %p1388_p4 = por %p1626_p1, %p46_p0  ;;  %p907_p5 = scmp.ge.s32.totalorder %s1315_s24, 1 }
  0x11   : > { %p1393_p6 = por %p191_p3, %p46_p0  ;;  %p198_p7 = scmp.lt.s32.totalorder %s1315_s24, 3 }
  0x12   : > { %s1636_s3 = sld [smem:[#allocation22_spill]]  ;;  %s1317_s9 = smov [#allocation8]  }
  0x13   : > { %s1634_s28 = scalar_select %p1393_p6, 1, 0 }
  0x14   : > { %p1401_p8 = pnand %p907_p5, %p198_p7  ;;  %s211_s10 = sshll.u32 %s1317_s9, 4  ;;  %s212_s10 = int_to_ptr.vmem [resolvable:$true] %s211_s10 }
  0x15   : > { %1635 = sst [smem:[#allocation18_spill]] %s1634_s28  ;;  %s1415_s12 = sadd.s32 1, %s1315_s24  }
  0x16   : > { %p1023_p9 = pneg %p1401_p8  ;;  %1639 = sst [smem:[#allocation19_spill]] %s1415_s12 }
  0x17   : > { %s1618_s13 = smov 64   ;;  %s1620_s14 = smov 4  }
  0x18   : > { %s209_s7 = sshll.u32 %s1636_s3, 4  ;;  %p1409_p10 = pnand %p1023_p9, %p1626_p1  ;;  %s210_s7 = int_to_ptr.hbm [resolvable:$true] %s209_s7 }
  0x19   : > { %s30_s15 = ssub.s32 %s1315_s24, %s1415_s12  ;;  %s33_s16 = sadd.s32 1, %s1311_s23 }
  0x1a   : > { %1026 = dma.hbm_to_vmem [thread:$0]  (!%p1409_p10), %s210_s7, 768, %s212_s10, [#allocation9], %s1618_s13, %s1618_s13, %s1620_s14  }
  0x1b   : > { %p31_p12 = scmp.eq.s32.totalorder %s30_s15, 0  ;;  %p40_p13 = scmp.ne.s32.totalorder %s1311_s23, %s1307_s22 }
  0x1c   : > { %p41_p0 = scmp.eq.s32.totalorder %s1315_s24, 0  ;;  %p1046_p3 = scmp.lt.s32.totalorder %s1315_s24, 2 }
  0x1d   : > { %s1430_s17 = scalar_select %p31_p12, %s1311_s23, %s33_s16  }
  0x1e   : > { %p42_p5 = por %p41_p0, %p40_p13  ;;  %p1434_p7 = por %p185_p2, %p40_p13 }
  0x1f   : > { %1640 = sst [smem:[#allocation20_spill]] %s1430_s17  ;;  %s1439_s19 = sand.u32 1, %s1311_s23  }
  0x20   : > { %s264_s20 = sand.u32 1, %s1315_s24   ;;  %p1442_p9 = pnand %p1046_p3, %p42_p5 }
  0x21   : > { %s914_s29 = sshll.u32 %s1439_s19, 4  ;;  %s994_s30 = sshll.u32 %s1315_s24, 4 }
  0x22   : > { %s1643_s1 = sld [smem:[#allocation21_spill]]  ;;  %s268_s15 = scalar_lea.vmem [#allocation5], %s914_s29 }
  0x23   : > { %s276_s16 = sshll.u32 %s268_s15, 4  ;;  %s1644_s4 = sld [smem:[#allocation23_spill]]  ;;  %s277_s16 = int_to_ptr.vmem [resolvable:$true] %s276_s16 }
  0x24   : > { %s1454_s23 = scalar_lea.sflag [#allocation6], %s264_s20  ;;  %p1125_p12 = pneg %p1442_p9 }
  0x28   : > { %s273_s10 = scalar_lea.hbm %s1643_s1, %s994_s30  ;;  %s1128_s7 = scalar_lea.hbm %s1643_s1, 32 }
  0x29   : > { %s274_s13 = sshll.u32 %s273_s10, 4  ;;  %s223_s17 = sshll.u32 %s1644_s4, 4  ;;  %s275_s13 = int_to_ptr.hbm [resolvable:$true] %s274_s13  ;;  %s224_s17 = int_to_ptr.hbm [resolvable:$true] %s223_s17 }
  0x2a   : > { %s1121_s12 = sshra.s32 %s275_s13, 4  ;;  %s1122_s12 = int_to_ptr.hbm [resolvable:$true] %s1121_s12 }
  0x2b   : > { %s1123_s28 = scalar_lea.hbm %s1122_s12, 16  ;;  %p1129_p3 = scmp.lt.s32.totalorder %s1122_s12, %s1643_s1 }
  0x2c   : > { %p1124_p2 = scmp.ne.s32.totalorder %s1122_s12, %s1123_s28  ;;  %p1130_p5 = scmp.lt.s32.totalorder %s1128_s7, %s1123_s28 }
  0x2e   : > { %p1126_p13 = pnand %p1125_p12, %p1124_p2  ;;  %p1131_p11 = por %p1130_p5, %p1129_p3 }
  0x30   : > { %p1127_p0 = pneg %p1126_p13 }
  0x32   : > { %p1132_p1 = pnand %p1131_p11, %p1127_p0 }
  0x34   : > { %1135 = shalt.err (!%p1132_p1)
}
  0x35   : > { %s1320_s3 = smov 128   ;;  %s1321_s14 = smov 8  }
  0x36   : > { %1036 = dma.hbm_to_vmem [thread:$0]  (!%p1442_p9), %s275_s13, 256, %s277_s16, %s1454_s23, %s1320_s3, %s1320_s3, %s1321_s14  }
  0x37   : > { %s1322_s20 = smov [#allocation10]   ;;  %s911_s28 = sshll.u32 %s1439_s19, 3 }
  0x38   : > { %s225_s15 = sshll.u32 %s1322_s20, 4  ;;  %s1645_s12 = smov 4   ;;  %s226_s15 = int_to_ptr.vmem [resolvable:$true] %s225_s15 }
  0x39   : > { %s1646_s29 = smov 64   ;;  %s993_s30 = sshll.u32 %s1315_s24, 3 }
  0x3a   : > { %1029 = dma.hbm_to_vmem [thread:$0]  (!%p1409_p10), %s224_s17, 768, %s226_s15, [#allocation9], %s1646_s29, %s1646_s29, %s1645_s12  }
  0x3b   : > { %s251_s10 = scalar_lea.hbm %s1611_s0, %s993_s30  ;;  %s246_s1 = scalar_lea.vmem [#allocation2], %s911_s28 }
  0x3c   : > { %s254_s4 = sshll.u32 %s246_s1, 4  ;;  %s252_s21 = sshll.u32 %s251_s10, 4  ;;  %s255_s4 = int_to_ptr.vmem [resolvable:$true] %s254_s4  ;;  %s253_s21 = int_to_ptr.hbm [resolvable:$true] %s252_s21 }
  0x3d   : > { %s917_s13 = sshll.u32 %s1439_s19, 1  ;;  %s243_s16 = scalar_lea.sflag [#allocation3], %s1439_s19 }
  0x3e   : > { %s1181_s3 = sshra.s32 %s253_s21, 4  ;;  %s1188_s20 = scalar_lea.hbm %s1611_s0, 16  ;;  %s1182_s3 = int_to_ptr.hbm [resolvable:$true] %s1181_s3 }
  0x3f   : > { %s1183_s14 = scalar_lea.hbm %s1182_s3, 8  ;;  %p1189_p2 = scmp.lt.s32.totalorder %s1182_s3, %s1611_s0 }
  0x40   : > { %p1184_p1 = scmp.ne.s32.totalorder %s1182_s3, %s1183_s14  ;;  %p1190_p13 = scmp.lt.s32.totalorder %s1188_s20, %s1183_s14 }
  0x42   : > { %p1186_p11 = pnand %p1184_p1, %p1125_p12  ;;  %p1191_p0 = por %p1190_p13, %p1189_p2 }
  0x44   : > { %p1187_p10 = pneg %p1186_p11 }
  0x46   : > { %p1192_p3 = pnand %p1191_p0, %p1187_p10 }
  0x48   : > { %1195 = shalt.err (!%p1192_p3)
}
  0x49   : > { %1033 = dma.hbm_to_vmem [thread:$0]  (!%p1442_p9), %s253_s21, 128, %s255_s4, %s243_s16, %s1646_s29, %s1646_s29, %s1645_s12  }
  0x4a   : > { %s918_s1 = sshll.u32 %s1315_s24, 1  ;;  %s290_s9 = scalar_lea.vmem [#allocation7], %s917_s13 }
  0x4b   : > { %s294_s7 = scalar_lea.hbm %s1613_s2, %s918_s1  ;;  %s298_s10 = sshll.u32 %s290_s9, 4  ;;  %s299_s10 = int_to_ptr.vmem [resolvable:$true] %s298_s10 }
  0x4c   : > { %s296_s3 = sshll.u32 %s294_s7, 4  ;;  %s1218_s21 = scalar_lea.hbm %s1613_s2, 4  ;;  %s297_s3 = int_to_ptr.hbm [resolvable:$true] %s296_s3 }
  0x4d   : > { %s1211_s14 = sshra.s32 %s297_s3, 4  ;;  %s1212_s14 = int_to_ptr.hbm [resolvable:$true] %s1211_s14 }
  0x4e   : > { %s1213_s11 = scalar_lea.hbm %s1212_s14, 2  ;;  %p1219_p10 = scmp.lt.s32.totalorder %s1212_s14, %s1613_s2 }
  0x4f   : > { %p1214_p5 = scmp.ne.s32.totalorder %s1212_s14, %s1213_s11  ;;  %p1220_p2 = scmp.lt.s32.totalorder %s1218_s21, %s1213_s11 }
  0x51   : > { %p1216_p1 = pnand %p1214_p5, %p1125_p12  ;;  %p1221_p13 = por %p1220_p2, %p1219_p10 }
  0x53   : > { %p1217_p11 = pneg %p1216_p1 }
  0x55   : > { %p1222_p0 = pnand %p1221_p13, %p1217_p11 }
  0x57   : > { %1225 = shalt.err (!%p1222_p0)
}
  0x58   : > { %1039 = dma.hbm_to_vmem [thread:$0]  (!%p1442_p9), %s297_s3, 32, %s299_s10, %s1454_s23  }
  0x59   : > { %307 = sbr.rel (%p1401_p8) target bundleno = 1072 (0x430), region = 44  ;;  %s1515_s13 = sand.u32 (!%p1401_p8), 1, %s1307_s22  }
  0x5a   : > { %s920_s16 = sshll.u32 (!%p1401_p8), %s1515_s13, 3  ;;  %s310_s20 = scalar_lea.sflag (!%p1401_p8), [#allocation3], %s1515_s13 }
  0x5b   : > { %s313_s15 = scalar_lea.vmem (!%p1401_p8), [#allocation2], %s920_s16 }
  0x5e   : > { %1286 = dma.done.wait (%p1388_p4), %s310_s20, 128  }
  0x5f   : > { %1288 = vsyncadd (%p1388_p4), %s310_s20, 4294967168  ;;  %s319_s23 = sand.u32 1, %s1379_s25   ;;  %s921_s8 = sshll.u32 %s1515_s13, 4 }
  0x60   : > { %s320_s26 = scalar_lea.sflag [#allocation6], %s319_s23  ;;  %s323_s28 = scalar_lea.vmem [#allocation5], %s921_s8 }
  0x61   : > { %1290 = dma.done.wait (%p1388_p4), %s320_s26, 288  }
  0x62   : > { %1292 = vsyncadd (%p1388_p4), %s320_s26, 4294967008  ;;  %s922_s1 = sshll.u32 %s1515_s13, 1  ;;  %p1647_p8 = scmp.eq.s32.totalorder %s1379_s25, 0 }
  0x63   : > { %s1532_s19 = scalar_lea.vmem [#allocation7], %s922_s1 }
  0x64   : > { %1294 = dma.done.wait (%p1647_p8), [#allocation9], 1536   ;;  %p1648_p9 = pmov %p1647_p8 }
  0x65   : > { %v386_v0 = vld [vmem:[%s323_s28] sm:$0xff]  ;;  %vm394_vm0 = vcmask 1043456   ;;  %v387_v1 = vld [vmem:[%s323_s28 + $0x8] sm:$0xff]  ;;  %vm390_vm1 = vcmask 64512   ;;  %vm452_vm2 = vcmask 261120   ;;  %vm732_vm3 = vcmask 130048  }
  0x66   : > { %1296 = vsyncadd (%p1648_p9), [#allocation9], 4294965760  ;;  %v388_v2 = vpack.c.bf16 %v386_v0, %v386_v0  ;;  %v389_v3 = vpack.c.bf16 %v387_v1, %v387_v1  ;;  %v998_v4 = vld [vmem:[#allocation10 + $0x8] sm:$0xff]  ;;  %v996_v5 = vld [vmem:[#allocation8 + $0x8] sm:$0xff]  ;;  %v435_v11 = vpack.c.bf16 %v387_v1, %v386_v0  ;;  %s990_s14 = sshll.u32 %s1379_s25, 1  ;;  %s382_s21 = scalar_lea.vmem [#allocation11], %s922_s1 }
  0x67   : > { %462 = vmatpush.bf16.msra.mxu2 %v998_v4  ;;  %v1540_v8 = vld [vmem:[%s313_s15] sm:$0xf]  ;;  %v1542_v9 = vld [vmem:[%s313_s15 + $0x4] sm:$0xf]  ;;  %491 = vmatpush.bf16.msra.mxu3 %v996_v5  ;;  %v995_v12 = vld [vmem:[#allocation8] sm:$0xff]  ;;  %s769_s4 = scalar_lea.hbm %s1617_s6, %s990_s14  ;;  %s771_s12 = sshll.u32 %s382_s21, 4  ;;  %s772_s12 = int_to_ptr.vmem [resolvable:$true] %s771_s12 }
  0x68   : > { %v396_v6 = vsel %vm394_vm0, %v388_v2, 0  ;;  %v415_v7 = vsel %vm394_vm0, %v389_v3, 0  ;;  %v997_v10 = vld [vmem:[#allocation10] sm:$0xff]  ;;  %v1002_v18 = vld [vmem:[#allocation10 + $0x18] sm:$0xff]  ;;  %v1001_v19 = vld [vmem:[#allocation10 + $0x10] sm:$0xff]  ;;  %s773_s29 = sshll.u32 %s769_s4, 4  ;;  %s774_s29 = int_to_ptr.hbm [resolvable:$true] %s773_s29 }
  0x69   : > { %405 = vmatpush.bf16.msra.mxu0 %v396_v6  ;;  %424 = vmatpush.bf16.msra.mxu1 %v415_v7  ;;  %v1088_v21 = vld [vmem:[%s1616_s5] ss:$0 sm:$0xff]  ;;  %v1000_v36 = vld [vmem:[#allocation8 + $0x18] sm:$0xff]  ;;  %v999_v37 = vld [vmem:[#allocation8 + $0x10] sm:$0xff]  ;;  %vm756_vm4 = vcmask 254976   ;;  %s759_s16 = scalar_lea.sflag [#allocation4], %s1515_s13 }
  0x6a   : > { %v1006_v43 = vld [vmem:[#allocation10 + $0x28] sm:$0xff]  ;;  %v1005_v44 = vld [vmem:[#allocation10 + $0x20] sm:$0xff]  ;;  %v1089_v46 = vld [vmem:[%s1616_s5 + $0x1] ss:$0 sm:$0xff]  ;;  %s1255_s20 = sshra.s32 %s774_s29, 4  ;;  %s1261_s8 = scalar_lea.hbm %s1617_s6, 4  ;;  %s1256_s20 = int_to_ptr.hbm [resolvable:$true] %s1255_s20 }
  0x6b   : > { %463 = vmatpush.bf16.msra.mxu2 %v997_v10  ;;  %492 = vmatpush.bf16.msra.mxu3 %v995_v12  ;;  %v1004_v61 = vld [vmem:[#allocation8 + $0x28] sm:$0xff]  ;;  %v1003_v62 = vld [vmem:[#allocation8 + $0x20] sm:$0xff]  ;;  %s1257_s15 = scalar_lea.hbm %s1256_s20, 2  ;;  %p1262_p5 = scmp.lt.s32.totalorder %s1256_s20, %s1617_s6 }
  0x6c   : > { %926 = vmatmul.msk.bf16.vlgmr.msra.gmra.mxu0 %vm390_vm1, %v1540_v8  ;;  %927 = vmatmul.msk.bf16.vlgmr.msra.gmra.mxu1 %vm390_vm1, %v1542_v9  ;;  %p1258_p4 = scmp.ne.s32.totalorder %s1256_s20, %s1257_s15  ;;  %p1263_p1 = scmp.lt.s32.totalorder %s1261_s8, %s1257_s15 }
  0x6e   : > { %936 = vmatmul.msk.bf16.vlgmr.msra.gmra.mxu2 %vm452_vm2, %v435_v11  ;;  %p1259_p12 = pnand %p1258_p4, %p1434_p7  ;;  %p1264_p11 = por %p1263_p1, %p1262_p5 }
  0x6f   : > { %574 = vmatpush.bf16.msrb.mxu2 %v1002_v18  ;;  %603 = vmatpush.bf16.msrb.mxu3 %v1000_v36 }
  0x70   : > { %p1260_p3 = pneg %p1259_p12 }
  0x72   : > { %p1265_p10 = pnand %p1264_p11, %p1260_p3 }
  0x73   : > { %575 = vmatpush.bf16.msrb.mxu2 %v1001_v19  ;;  %604 = vmatpush.bf16.msrb.mxu3 %v999_v37 }
  0x77   : > { %687 = vmatpush.bf16.msra.mxu2 %v1006_v43 }
  0x7b   : > { %688 = vmatpush.bf16.msra.mxu2 %v1005_v44 }
  0xe9   : > { %v407_v13 = vpop.f32.mrf.mxu0  ;;  %v426_v14 = vpop.f32.mrf.mxu1 }
  0xea   : > { %v430_v15 = vpack.c.bf16 %v426_v14, %v407_v13  ;;  %v731_v13 = vld [vmem:[%s1532_s19] sm:$0x3] }
  0xec   : > { %945 = vmatmul.msk.bf16.vlgmr.msra.gmra.mxu3 %vm452_vm2, %v430_v15 }
  0xed   : > { %716 = vmatpush.bf16.msra.mxu3 %v1004_v61 }
  0xf1   : > { %v409_v16 = vpop.f32.mrf.mxu0  ;;  %v428_v17 = vpop.f32.mrf.mxu1  ;;  %717 = vmatpush.bf16.msra.mxu3 %v1003_v62 }
  0xf2   : > { %v465_v20 = vpop.f32.mrf.mxu2 }
  0xfa   : > { %v467_v27 = vpop.f32.mrf.mxu2 }
 0x16f   : > { %v494_v22 = vpop.f32.mrf.mxu3 }
 0x170   : > { %v495_v23 = vadd.f32 %v494_v22, %v465_v20 }
 0x172   : > { %v503_v24 = vadd.f32 %v1088_v21, %v495_v23 }
 0x174   : > { %v505_v25 = vmax.f32 %v503_v24, 0.0 }
 0x176   : > { %v507_v26 = vpack.c.bf16 %v505_v25, %v505_v25 }
 0x177   : > { %v496_v28 = vpop.f32.mrf.mxu3 }
 0x178   : > { %v497_v29 = vadd.f32 %v496_v28, %v467_v27  ;;  %v510_v30 = vsel %vm394_vm0, %v507_v26, 0 }
 0x179   : > { %519 = vmatpush.bf16.msrb.mxu0 %v510_v30 }
 0x17a   : > { %v504_v31 = vadd.f32 %v1088_v21, %v497_v29 }
 0x17c   : > { %v506_v32 = vmax.f32 %v504_v31, 0.0  ;;  %946 = vmatmul.msk.bf16.vlgmr.msrb.gmra.mxu0 %vm390_vm1, %v1540_v8 }
 0x17e   : > { %v547_v33 = vpack.c.bf16 %v506_v32, %v505_v25  ;;  %v508_v34 = vpack.c.bf16 %v506_v32, %v506_v32 }
 0x180   : > { %956 = vmatmul.msk.bf16.vlgmr.msrb.gmra.mxu2 %vm452_vm2, %v547_v33  ;;  %v526_v35 = vsel %vm394_vm0, %v508_v34, 0 }
 0x181   : > { %535 = vmatpush.bf16.msrb.mxu1 %v526_v35 }
 0x184   : > { %947 = vmatmul.msk.bf16.vlgmr.msrb.gmra.mxu1 %vm390_vm1, %v1542_v9 }
 0x1f9   : > { %v521_v38 = vpop.f32.mrf.mxu0 }
 0x201   : > { %v523_v39 = vpop.f32.mrf.mxu0  ;;  %v537_v40 = vpop.f32.mrf.mxu1 }
 0x202   : > { %v541_v41 = vpack.c.bf16 %v537_v40, %v521_v38 }
 0x203   : > { %v577_v45 = vpop.f32.mrf.mxu2 }
 0x204   : > { %965 = vmatmul.msk.bf16.vlgmr.msrb.gmra.mxu3 %vm452_vm2, %v541_v41 }
 0x209   : > { %v539_v42 = vpop.f32.mrf.mxu1 }
 0x20b   : > { %v579_v52 = vpop.f32.mrf.mxu2 }
 0x287   : > { %v606_v47 = vpop.f32.mrf.mxu3 }
 0x288   : > { %v607_v48 = vadd.f32 %v606_v47, %v577_v45 }
 0x28a   : > { %v616_v49 = vadd.f32 %v1089_v46, %v607_v48 }
 0x28c   : > { %v618_v50 = vmax.f32 %v616_v49, 0.0 }
 0x28e   : > { %v620_v51 = vpack.c.bf16 %v618_v50, %v618_v50 }
 0x28f   : > { %v608_v53 = vpop.f32.mrf.mxu3 }
 0x290   : > { %v609_v54 = vadd.f32 %v608_v53, %v579_v52  ;;  %v623_v55 = vsel %vm394_vm0, %v620_v51, 0 }
 0x291   : > { %632 = vmatpush.bf16.msra.mxu0 %v623_v55 }
 0x292   : > { %v617_v56 = vadd.f32 %v1089_v46, %v609_v54 }
 0x294   : > { %v619_v57 = vmax.f32 %v617_v56, 0.0  ;;  %967 = vmatmul.msk.bf16.vlgmr.msra.gmra.mxu0 %vm390_vm1, %v1540_v8 }
 0x296   : > { %v621_v58 = vpack.c.bf16 %v619_v57, %v619_v57  ;;  %v660_v59 = vpack.c.bf16 %v619_v57, %v618_v50 }
 0x298   : > { %977 = vmatmul.msk.bf16.vlgmr.msra.gmra.mxu2 %vm452_vm2, %v660_v59  ;;  %v639_v60 = vsel %vm394_vm0, %v621_v58, 0 }
 0x299   : > { %648 = vmatpush.bf16.msra.mxu1 %v639_v60 }
 0x29c   : > { %968 = vmatmul.msk.bf16.vlgmr.msra.gmra.mxu1 %vm390_vm1, %v1542_v9  ;;  %v1090_v9 = vld [vmem:[%s1616_s5 + $0x2] ss:$0 sm:$0xff] }
 0x311   : > { %v634_v63 = vpop.f32.mrf.mxu0 }
 0x319   : > { %v636_v0 = vpop.f32.mrf.mxu0  ;;  %v650_v1 = vpop.f32.mrf.mxu1 }
 0x31a   : > { %v654_v2 = vpack.c.bf16 %v650_v1, %v634_v63 }
 0x31b   : > { %v690_v4 = vpop.f32.mrf.mxu2 }
 0x31c   : > { %986 = vmatmul.msk.bf16.vlgmr.msra.gmra.mxu3 %vm452_vm2, %v654_v2 }
 0x321   : > { %v652_v3 = vpop.f32.mrf.mxu1 }
 0x323   : > { %v692_v6 = vpop.f32.mrf.mxu2 }
 0x39f   : > { %v719_v5 = vpop.f32.mrf.mxu3 }
 0x3a0   : > { %v720_v8 = vadd.f32 %v719_v5, %v690_v4 }
 0x3a2   : > { %v729_v12 = vadd.f32 %v1090_v9, %v720_v8 }
 0x3a7   : > { %v721_v7 = vpop.f32.mrf.mxu3 }
 0x3a8   : > { %v722_v10 = vadd.f32 %v721_v7, %v692_v6 }
 0x3aa   : > { %v730_v11 = vadd.f32 %v1090_v9, %v722_v10 }
 0x3ac   : > { %750 = vmatpush.msrb.mxu0 %v730_v11 }
 0x3ae   : > { %751 = vmatpush.msrb.mxu0 %v729_v12 }
 0x3af   : > { %988 = vmatmul.msk.f32.vlgmr.msrb.gmra.mxu0 %vm732_vm3, %v731_v13 }
 0x42c   : > { %v753_v14 = vpop.f32.mrf.mxu0 }
 0x42d   : > { %757 = vst.msk [vmem:[%s382_s21] sm:$0x3] %vm756_vm4, %v753_v14 }
 0x42e   : > { %1268 = shalt.err (!%p1265_p10)
}
 0x42f   : > { %1021 = dma.vmem_to_hbm [thread:$0]  (%p1434_p7), %s772_s12, 32, %s774_s29, %s759_s16  }
 0x430 PF: > { %s1649_s13 = sld [smem:[#allocation16_spill]]  ;;  %p1651_p2 = scmp.ge.s32.totalorder %s1315_s24, 2 }
 0x432   : > { %p1041_p13 = pnand %p1651_p2, %p1393_p6 }
 0x434   : > { %p1042_p0 = pneg %p1041_p13 }
 0x436   : > { %s785_s19 = sand.u32 1, %s1649_s13  }
 0x437   : > { %s786_s27 = scalar_lea.sflag [#allocation4], %s785_s19 }
 0x438   : > { %1298 = dma.done.wait (%p1042_p0), %s786_s27, 32  }
 0x439   : > { %1300 = vsyncadd (%p1042_p0), %s786_s27, 4294967264  ;;  %s1652_s24 = sld [smem:[#allocation19_spill]]  ;;  %s1655_s21 = smov %s1307_s22 }
 0x43a   : > { %s1653_s30 = sld [smem:[#allocation17_spill]] }
 0x43b   : > { %s1654_s23 = sld [smem:[#allocation20_spill]] }
 0x43f   : > { %p23_p8 = scmp.ge.s32.totalorder %s1652_s24, 4  }
 0x440   : > { %s1656_s22 = smov %s1653_s30 }
 0x441   :  { %25 = sbr.rel (!%p23_p8) target bundleno = 12 (0xc), region = 127 }
 0x446   :  { %792 = vsyncpa [#allocation3], 1 }
 0x447   :  { %794 = vsyncpa [#allocation3 + $0x1], 1 }
 0x448   :  { %795 = vsyncpa [#allocation6], 1 }
 0x449   :  { %797 = vsyncpa [#allocation6 + $0x1], 1 }
 0x44a   :  { %798 = vsyncpa [#allocation9], 1 }
 0x44b   :  { %799 = vsyncpa [#allocation4], 1 }
 0x44c   :  { %801 = vsyncpa [#allocation4 + $0x1], 1 }

</bundles_post_ra>
